<compile_context>
chip_gen: v6e
topology: v6e:2x2x1
jax: 0.10.0
libtpu: 0.0.40
codegen_flags: <defaults>
</compile_context>

<pallas_src>
import jax
import jax.numpy as jnp
from jax.experimental import pallas as pl
from jax.experimental.pallas import tpu as pltpu


def _round_down(x, m):
    return (x // m) * m


def _trans_tanh_kernel(x_ref, r_ref, o_ref):
    # tanh -> EUP slot, multiply -> VPU slot; both have large slack here, the
    # kernel is HBM-bound.  r broadcasts over lanes and/or sublanes.
    x = x_ref[...].astype(jnp.float32)
    r = r_ref[...].astype(jnp.float32)
    o_ref[...] = (jnp.tanh(x) * r).astype(o_ref.dtype)


def _choose_tiles(rows, cols, itemsize, target_block_bytes, min_grid_steps=4):
    """Pick (tile_r, tile_c) ~= target_block_bytes, honoring the (8,128) rule."""
    # ---- column (lane) tile ------------------------------------------------
    if cols % 128 == 0:
        # Bound the column tile so even an 8-row block stays within budget
        # (keeps blocks in the multi-MiB sweet spot regardless of H*W).
        max_tile_c = max(128, _round_down(target_block_bytes // (8 * itemsize), 128))
        tile_c = min(cols, max_tile_c)
    else:
        # Full-extent lane block (allowed by the full-dim rule); edge lanes
        # cost a masked vst, far cheaper than a wrapper-side pad + slice pass.
        # TODO(synk): for very large non-128-multiple cols this single block
        # could exceed VMEM; would need in-kernel masking of a padded tile.
        tile_c = cols
    n_col = pl.cdiv(cols, tile_c)

    # ---- row (sublane) tile --------------------------------------------------
    if rows <= 8:
        tile_r = rows                                   # full-extent row block
    else:
        tile_r = max(8, _round_down(target_block_bytes // (tile_c * itemsize), 8))
        # Keep >= min_grid_steps total steps so both v7x TensorCores get work.
        want_row_steps = pl.cdiv(min_grid_steps, n_col)
        if want_row_steps > 1:
            cap = max(8, _round_down(rows // want_row_steps, 8))
            tile_r = min(tile_r, cap)
        if tile_r >= rows:
            tile_r = rows                               # single full-extent block
    n_row = pl.cdiv(rows, tile_r)
    return tile_r, tile_c, n_row, n_col


def trans_tanh(x_nchw, range_tensor, *, target_block_bytes=4 * 1024 * 1024):
    """Equivalent of TransTanh.forward: tanh(x) * range_tensor (NCHW)."""
    N, C, H, W = x_nchw.shape
    dtype = x_nchw.dtype
    itemsize = jnp.dtype(dtype).itemsize

    # ---- normalize range_tensor (NumPy/PyTorch broadcasting rules) ----------
    r = jnp.asarray(range_tensor, dtype=dtype)
    if r.ndim > 4:
        # Would change the output rank under PyTorch broadcasting.
        raise ValueError("range_tensor must be broadcastable to the 4-D input.")
    r4 = (1,) * (4 - r.ndim) + tuple(r.shape)
    r = r.reshape(r4)
    jnp.broadcast_shapes(r4, (N, C, H, W))        # raises if incompatible
    per_row = (r4[2] == 1 and r4[3] == 1)         # constant over H and W?

    if per_row:
        # Common case: tiny (rows, 1) range column, broadcast over lanes.
        rows, cols = N * C, H * W
        x2d = x_nchw.reshape(rows, cols)
        r2d = jnp.broadcast_to(r, (N, C, 1, 1)).reshape(rows, 1)
        r_rows, r_cols = rows, 1
    else:
        # range varies over H and/or W: N on the row axis, C*H*W on lanes, so
        # an N-independent range block is reused across row tiles (no N-fold
        # broadcast materialized in HBM, no third full-size read stream).
        rows, cols = N, C * H * W
        x2d = x_nchw.reshape(rows, cols)
        r_rows = 1 if r4[0] == 1 else N
        r2d = jnp.broadcast_to(r, (r_rows, C, H, W)).reshape(r_rows, cols)
        r_cols = cols

    tile_r, tile_c, n_row, n_col = _choose_tiles(
        rows, cols, itemsize, target_block_bytes)

    # range tiles follow x tiles except along broadcast (size-1) dims.
    r_tile_r = 1 if r_rows == 1 else tile_r
    r_tile_c = 1 if r_cols == 1 else tile_c

    def x_map(i, j):
        return (i, j)

    def r_map(i, j):
        return (0 if r_rows == 1 else i, 0 if r_cols == 1 else j)

    # NOTE: input_output_aliases={0: 0} would write in place, but is only safe
    # if the caller donates x; skipped to keep the wrapper side-effect free.
    out2d = pl.pallas_call(
        _trans_tanh_kernel,
        out_shape=jax.ShapeDtypeStruct((rows, cols), dtype),
        grid=(n_row, n_col),
        in_specs=[
            pl.BlockSpec((tile_r, tile_c), x_map),
            pl.BlockSpec((r_tile_r, r_tile_c), r_map),
        ],
        out_specs=pl.BlockSpec((tile_r, tile_c), x_map),
        compiler_params=pltpu.CompilerParams(
            # Independent elementwise tiles: shard across v7x's 2 TensorCores
            # (measured no-op on single-core v5e/v6e).
            dimension_semantics=("parallel", "parallel"),
            # Cover 2x double-buffered (x + out) ~4 MiB tiles plus the range
            # block with headroom; v5e's scoped default is only 16 MiB.
            vmem_limit_bytes=48 * 1024 * 1024,
        ),
    )(x2d, r2d)

    return out2d.reshape(N, C, H, W)


if __name__ == "__main__":
    key = jax.random.PRNGKey(0)
    k_x, k_r = jax.random.split(key)

    N, C, H, W = 2, 4, 16, 16
    x = jax.random.normal(k_x, (N, C, H, W), dtype=jnp.float32)
    # Deterministic per-channel range tensor, shape (1, C, 1, 1).
    range_tensor = 1.0 + jax.random.uniform(k_r, (1, C, 1, 1), dtype=jnp.float32)

    out = trans_tanh(x, range_tensor)
    out = jax.block_until_ready(out)

    # Reference check (plain JAX).
    ref = jnp.tanh(x) * range_tensor
    assert out.shape == (N, C, H, W)
    assert jnp.allclose(out, ref, atol=1e-5, rtol=1e-5)

    # Also exercise the H/W-varying range fallback path once.
    r_hw = 1.0 + jax.random.uniform(jax.random.PRNGKey(1), (1, 1, H, W),
                                    dtype=jnp.float32)
    out2 = jax.block_until_ready(trans_tanh(x, r_hw))
    assert jnp.allclose(out2, jnp.tanh(x) * r_hw, atol=1e-5, rtol=1e-5)

    print("KERNEL_OK")
</pallas_src>

<mosaic_0001>
module attributes {stable_mosaic.version = 11 : i64} {
  func.func @_trans_tanh_kernel(%arg0: i32, %arg1: i32, %arg2: memref<8x256xf32, #tpu.memory_space<vmem>>, %arg3: memref<8x1xf32, #tpu.memory_space<vmem>>, %arg4: memref<8x256xf32, #tpu.memory_space<vmem>>) attributes {dimension_semantics = [#tpu.dimension_semantics<parallel>, #tpu.dimension_semantics<parallel>], iteration_bounds = array<i64: 1, 1>, scalar_prefetch = 0 : i64, scratch_operands = 0 : i64, tpu.core_type = #tpu.core_type<tc>, window_params = [{transform_indices = @transform_0, window_bounds = array<i64: 8, 256>}, {transform_indices = @transform_1, window_bounds = array<i64: 8, 1>}, {transform_indices = @transform_2, window_bounds = array<i64: 8, 256>}]} {
    %c0 = arith.constant 0 : index
    %c0_0 = arith.constant 0 : index
    %0 = vector.load %arg2[%c0, %c0_0] : memref<8x256xf32, #tpu.memory_space<vmem>>, vector<8x256xf32>
    %c0_1 = arith.constant 0 : index
    %c0_2 = arith.constant 0 : index
    %1 = vector.load %arg3[%c0_1, %c0_2] : memref<8x1xf32, #tpu.memory_space<vmem>>, vector<8x1xf32>
    %2 = math.tanh %0 : vector<8x256xf32>
    %3 = vector.broadcast %1 : vector<8x1xf32> to vector<8x256xf32>
    %4 = arith.mulf %2, %3 : vector<8x256xf32>
    %c0_3 = arith.constant 0 : index
    %c0_4 = arith.constant 0 : index
    %5 = vector.load %arg4[%c0_3, %c0_4] : memref<8x256xf32, #tpu.memory_space<vmem>>, vector<8x256xf32>
    tpu.vector_store %arg4[%c0_3, %c0_4], %4 {strides = array<i32>} : memref<8x256xf32, #tpu.memory_space<vmem>>, vector<8x256xf32>,
    return
  }
  func.func @transform_0(%arg0: i32, %arg1: i32) -> (i32, i32) {
    %c0_i32 = arith.constant 0 : i32
    return %arg0, %arg1 : i32, i32
  }
  func.func @transform_1(%arg0: i32, %arg1: i32) -> (i32, i32) {
    %c0_i32 = arith.constant 0 : i32
    %c0_i32_0 = arith.constant 0 : i32
    return %arg0, %c0_i32 : i32, i32
  }
  func.func @transform_2(%arg0: i32, %arg1: i32) -> (i32, i32) {
    %c0_i32 = arith.constant 0 : i32
    return %arg0, %arg1 : i32, i32
  }
}

</mosaic_0001>

<bundles_post_ra>
// kernel: tpu_custom_call.1
= control target key start
LH: loop header
LB: loop body
LE: loop exit
PB: predicated region body
PF: predicated region fallthrough
CT: control target
= control target key end

     0   :  { %7 = vsyncpa [#allocation3], 0  ;;  %s132_s0 = inlined_call_operand.hbm [shape: f32[8,256], index: 0, kind: input, shape index: {}]   ;;  %s133_s1 = inlined_call_operand.vmem [shape: f32[8,1], index: 1, kind: input, shape index: {}]   ;;  %s134_s2 = inlined_call_operand.hbm [shape: f32[8,256], index: 2, kind: output, shape index: {}]  }
   0x1   :  { %8 = vsyncpa [#allocation4], 0  ;;  %s105_s9 = smov [#allocation2]  }
   0x2   :  { %s15_s10 = sshll.u32 %s105_s9, 4  ;;  %s16_s10 = int_to_ptr.vmem [resolvable:$true] %s15_s10 }
   0x3   :  { %s69_s11 = scalar_lea.vmem %s16_s10, 256  ;;  %p74_p1 = scmp.lt.s32.totalorder %s16_s10, %s16_s10 }
   0x4   :  { %p70_p0 = scmp.ne.s32.totalorder %s16_s10, %s69_s11  ;;  %p75_p2 = scmp.lt.s32.totalorder %s69_s11, %s69_s11 }
   0x6   :  { %p76_p3 = por %p75_p2, %p74_p1 }
   0x8   :  { %p77_p4 = pnand %p76_p3, %p70_p0 }
   0xa   :  { %80 = shalt.err (!%p77_p4)
}
   0xb   :  { %18 = dma.hbm_to_vmem [thread:$0]  %s132_s0, 256, %s16_s10, [#allocation3]  }
   0xc   :  { %101 = dma.done.wait [#allocation3], 256  }
   0xd   :  { %102 = vsyncadd [#allocation3], 4294967040  ;;  %v106_v0 = vmov 0   ;;  %v26_v1 = vld [vmem:[%s133_s1] sm:$0xff]  ;;  %v25_v3 = vld [vmem:[#allocation2 + $0x8] sm:$0xff]  ;;  %s107_s16 = smov [#allocation5]  }
   0xe   :  { %56 = vset.pattern.permute.xlu0 %v106_v0  ;;  %v24_v2 = vld [vmem:[#allocation2] sm:$0xff]  ;;  %s44_s17 = sshll.u32 %s107_s16, 4  ;;  %s45_s17 = int_to_ptr.vmem [resolvable:$true] %s44_s17 }
   0xf   :  { %31 = vperm.xlu0 %56, %v26_v1   ;;  %57 = vtanh.f32 %v24_v2  ;;  %s81_s0 = scalar_lea.vmem %s45_s17, 256  ;;  %p86_p6 = scmp.lt.s32.totalorder %s45_s17, %s45_s17 }
  0x10   :  { %59 = vtanh.f32 %v25_v3  ;;  %p82_p5 = scmp.ne.s32.totalorder %s45_s17, %s81_s0  ;;  %p87_p7 = scmp.lt.s32.totalorder %s81_s0, %s81_s0 }
  0x12   :  { %p88_p8 = por %p87_p7, %p86_p6 }
  0x14   :  { %p89_p9 = pnand %p88_p8, %p82_p5 }
  0x1c   :  { %v58_v4 = vpop.eup %57 }
  0x1d   :  { %v60_v5 = vpop.eup %59 }
  0x8a   :  { %v32_v6 = vpop.permute.xlu0 %31 }
  0x8b   :  { %v34_v7 = vmul.f32 %v58_v4, %v32_v6  ;;  %v35_v8 = vmul.f32 %v60_v5, %v32_v6 }
  0x8d   :  { %36 = vst [vmem:[#allocation5] sm:$0xff] %v34_v7  ;;  %37 = vst [vmem:[#allocation5 + $0x8] sm:$0xff] %v35_v8 }
  0x8e   :  { %92 = shalt.err (!%p89_p9)
}
  0x8f   :  { %47 = dma.vmem_to_hbm [thread:$0]  %s45_s17, 256, %s134_s2, [#allocation4]  }
  0x90   :  { %103 = dma.done.wait [#allocation4], 256  }
  0x91   :  { %104 = vsyncadd [#allocation4], 4294967040 }
  0x92   :  { %51 = vsyncpa [#allocation3], 1 }
  0x93   :  { %52 = vsyncpa [#allocation4], 1 }

</bundles_post_ra>
